<compile_context>
chip_gen: v7x
topology: tpu7x:2x2x1
jax: 0.10.0
libtpu: 0.0.40
codegen_flags: <defaults>
</compile_context>

<pallas_src>
import functools

import jax
import jax.numpy as jnp
from jax.experimental import pallas as pl
from jax.experimental.pallas import tpu as pltpu


def _int_pow(q, n):
    """q ** n for a static non-negative integer n via multiply chain (no EUP pow)."""
    if n == 0:
        return jnp.ones_like(q)
    acc = None
    base = q
    while n:
        if n & 1:
            acc = base if acc is None else acc * base
        n >>= 1
        if n:
            base = base * base
    return acc


def _focal_loss_kernel(pred_ref, tgt_ref, out_ref, *, gamma, alpha, n_valid, needs_mask):
    # pred_ref: (BG, G, C) logits; tgt_ref: (BG, G, 1) int32 labels; out_ref: (1, G, C).
    x = pred_ref[...].astype(jnp.float32)            # upcast bf16 in-kernel
    labels = tgt_ref[...]
    bg, g, c = x.shape

    # One-hot over C classes; label == C ("background") -> all-zero row, equivalent to
    # zeros(N, C+1).scatter_(1, target, 1)[:, :C] in the original npu implementation.
    col = jax.lax.broadcasted_iota(jnp.int32, (bg, g, c), 2)
    t = (col == labels).astype(jnp.float32)

    # Single exp shared between sigmoid and the numerically-stable BCE-with-logits.
    e = jnp.exp(-jnp.abs(x))
    d = 1.0 + e
    r = pl.reciprocal(d, approx=True)
    r = r * (2.0 - d * r)                            # one Newton step -> ~f32-accurate 1/d (VPU only)
    p = jnp.where(x >= 0.0, r, e * r)                # sigmoid(x)
    ce = jnp.maximum(x, 0.0) - x * t + jnp.log1p(e)  # BCE-with-logits, reduction='none'

    p_t = p * t + (1.0 - p) * (1.0 - t)
    q = 1.0 - p_t
    if float(gamma) == float(int(gamma)) and gamma >= 0:
        mod = _int_pow(q, int(gamma))                # default gamma=2.0 -> q*q, no exp/log
    else:
        mod = q ** gamma                             # non-integer gamma fallback
    loss = ce * mod
    if alpha >= 0:
        # alpha*t + (1-alpha)*(1-t) == (1-alpha) + (2*alpha-1)*t  (single FMA)
        loss = ((1.0 - alpha) + (2.0 * alpha - 1.0) * t) * loss

    if needs_mask:
        # Only traced when padding / grid over-coverage exists (ragged N); zero the
        # contribution of rows past the true N.
        i = pl.program_id(0)
        gidx = jax.lax.broadcasted_iota(jnp.int32, (bg, g, 1), 0)
        sidx = jax.lax.broadcasted_iota(jnp.int32, (bg, g, 1), 1)
        row = (i * bg + gidx) * g + sidx
        loss = jnp.where(row < n_valid, loss, 0.0)

    # Sublane-direction partial: axis-0 accumulation is plain VPU adds (no XLU),
    # followed by one lane-dense store.  Final sum + mean scaling happens in the wrapper.
    out_ref[0] = jnp.sum(loss, axis=0)


def focal_loss(pred, target, gamma=2.0, alpha=0.25, loss_weight=1.0, reduction='mean'):
    """FocalLoss.forward(pred, target) with defaults:
    use_sigmoid=True, weight=None, avg_factor=None, reduction='mean'.
    pred: (N, C) logits (f32 or bf16); target: (N,) int labels in [0, C]
    (label == C means "background" / all-zero one-hot row).  Returns a scalar f32 loss.
    """
    # TODO(synk): sample-wise `weight`, `avg_factor`, and reduction='none' paths of
    # weight_reduce_loss are not wired in (FocalLoss.forward defaults leave them None/'mean').
    n, c = pred.shape
    itemsize = jnp.dtype(pred.dtype).itemsize

    def round_up(v, m):
        return ((v + m - 1) // m) * m

    def cdiv(a, b):
        return -(-a // b)

    # Rows per sublane group: 8 for 32-bit, 16 for 16-bit (bf16 (16,128) packing rule).
    g = 8 if itemsize >= 4 else 16

    tgt = target.astype(jnp.int32)
    n_pad = round_up(n, g)
    if n_pad != n:
        # Rare ragged path: pad to a whole sublane group; padded rows are masked in-kernel.
        pred = jnp.pad(pred, ((0, n_pad - n), (0, 0)))
        tgt = jnp.pad(tgt, (0, n_pad - n), constant_values=c)
    g_total = n_pad // g
    pred3 = pred.reshape(g_total, g, c)   # free row-major view (bitcast)
    tgt3 = tgt.reshape(g_total, g, 1)

    # --- block sizing: budget against the lane-padded class count --------------------
    lane_c = round_up(c, 128)                        # C=80 occupies 128 lanes in VMEM
    per_buf_budget = 4 * 1024 * 1024                 # pred tile is double-buffered by Pallas
    rows_cap = max(g, min(8192, (per_buf_budget // (lane_c * itemsize)) // g * g))
    # Prefer >= 4 grid blocks (v7x megacore sharding + pipelining) when N is big enough.
    rows_for_parallel = round_up(cdiv(n_pad, 4), g)
    block_rows = max(g, min(rows_cap, rows_for_parallel))
    block_g = block_rows // g
    num_blocks = cdiv(g_total, block_g)
    needs_mask = (num_blocks * block_g * g) != n     # static: aligned case carries no mask ops

    kernel = functools.partial(
        _focal_loss_kernel, gamma=gamma, alpha=alpha, n_valid=n, needs_mask=needs_mask)

    cost = pl.CostEstimate(
        flops=15 * n * c,
        transcendentals=3 * n * c,                   # exp + log1p + vrcp per element
        bytes_accessed=n_pad * c * itemsize + n_pad * 4 + num_blocks * g * c * 4,
    )

    partials = pl.pallas_call(
        kernel,
        out_shape=jax.ShapeDtypeStruct((num_blocks, g, c), jnp.float32),
        grid=(num_blocks,),
        in_specs=[
            pl.BlockSpec((block_g, g, c), lambda i: (i, 0, 0)),   # pred tile
            pl.BlockSpec((block_g, g, 1), lambda i: (i, 0, 0)),   # label tile
        ],
        out_specs=pl.BlockSpec((1, g, c), lambda i: (i, 0, 0)),
        compiler_params=pltpu.CompilerParams(
            dimension_semantics=("parallel",),       # row blocks are independent
            vmem_limit_bytes=32 * 1024 * 1024,
        ),
        cost_estimate=cost,
    )(pred3, tgt3)

    total = jnp.sum(partials)
    if reduction == 'mean':
        total = total / (n * c)
    elif reduction == 'sum':
        pass
    else:
        raise NotImplementedError("reduction='none' not supported in this kernel")
    return loss_weight * total


def _focal_loss_ref(pred, target, gamma=2.0, alpha=0.25, loss_weight=1.0):
    """Pure-JAX reference mirroring the PyTorch code, for a sanity check."""
    n, c = pred.shape
    t = (jnp.arange(c)[None, :] == target[:, None]).astype(jnp.float32)
    x = pred.astype(jnp.float32)
    p = jax.nn.sigmoid(x)
    ce = jnp.maximum(x, 0.0) - x * t + jnp.log1p(jnp.exp(-jnp.abs(x)))
    p_t = p * t + (1.0 - p) * (1.0 - t)
    loss = ce * (1.0 - p_t) ** gamma
    alpha_t = alpha * t + (1.0 - alpha) * (1.0 - t)
    loss = alpha_t * loss
    return loss_weight * jnp.mean(loss)


if __name__ == "__main__":
    key = jax.random.PRNGKey(0)
    k1, k2, k3, k4, k5, k6 = jax.random.split(key, 6)

    # C = 80 classes (the original npu code hardcodes [:, :80] / COCO).
    N, C = 16, 80

    # 1) f32, group-aligned N (no mask path).
    pred = jax.random.normal(k1, (N, C), dtype=jnp.float32) * 2.0
    target = jax.random.randint(k2, (N,), 0, C + 1, dtype=jnp.int32)  # label==C -> background
    loss = jax.block_until_ready(focal_loss(pred, target))
    ref = _focal_loss_ref(pred, target)
    assert jnp.allclose(loss, ref, rtol=1e-4, atol=1e-6), (loss, ref)

    # 2) f32, ragged N (exercises the tail-mask path).
    N2 = 13
    pred2 = jax.random.normal(k3, (N2, C), dtype=jnp.float32) * 2.0
    target2 = jax.random.randint(k4, (N2,), 0, C + 1, dtype=jnp.int32)
    loss2 = jax.block_until_ready(focal_loss(pred2, target2))
    ref2 = _focal_loss_ref(pred2, target2)
    assert jnp.allclose(loss2, ref2, rtol=1e-4, atol=1e-6), (loss2, ref2)

    # 3) bf16 logits with N not a multiple of 16 (16-row groups + pad + mask path).
    N3 = 17
    pred3 = (jax.random.normal(k5, (N3, C), dtype=jnp.float32) * 2.0).astype(jnp.bfloat16)
    target3 = jax.random.randint(k6, (N3,), 0, C + 1, dtype=jnp.int32)
    loss3 = jax.block_until_ready(focal_loss(pred3, target3))
    ref3 = _focal_loss_ref(pred3, target3)
    assert jnp.allclose(loss3, ref3, rtol=1e-3, atol=1e-5), (loss3, ref3)

    print("KERNEL_OK")
</pallas_src>

<mosaic_0001>
module attributes {stable_mosaic.version = 11 : i64} {
  func.func @_focal_loss_kernel(%arg0: i32, %arg1: memref<1x8x80xf32, #tpu.memory_space<vmem>>, %arg2: memref<1x8x1xi32, #tpu.memory_space<vmem>>, %arg3: memref<1x8x80xf32, #tpu.memory_space<vmem>>) attributes {dimension_semantics = [#tpu.dimension_semantics<parallel>], iteration_bounds = array<i64: 2>, scalar_prefetch = 0 : i64, scratch_operands = 0 : i64, tpu.core_type = #tpu.core_type<tc>, window_params = [{transform_indices = @transform_0, window_bounds = array<i64: 1, 8, 80>}, {transform_indices = @transform_1, window_bounds = array<i64: 1, 8, 1>}, {transform_indices = @transform_2, window_bounds = array<i64: 1, 8, 80>}]} {
    %c0 = arith.constant 0 : index
    %c0_0 = arith.constant 0 : index
    %c0_1 = arith.constant 0 : index
    %0 = vector.load %arg1[%c0, %c0_0, %c0_1] : memref<1x8x80xf32, #tpu.memory_space<vmem>>, vector<1x8x80xf32>
    %c0_2 = arith.constant 0 : index
    %c0_3 = arith.constant 0 : index
    %c0_4 = arith.constant 0 : index
    %1 = vector.load %arg2[%c0_2, %c0_3, %c0_4] : memref<1x8x1xi32, #tpu.memory_space<vmem>>, vector<1x8x1xi32>
    %2 = tpu.iota {dimensions = array<i32: 2>} : vector<1x8x80xi32>
    %3 = vector.broadcast %1 : vector<1x8x1xi32> to vector<1x8x80xi32>
    %4 = arith.cmpi eq, %2, %3 : vector<1x8x80xi32>
    %5 = arith.extui %4 : vector<1x8x80xi1> to vector<1x8x80xi32>
    %6 = arith.sitofp %5 : vector<1x8x80xi32> to vector<1x8x80xf32>
    %7 = math.absf %0 : vector<1x8x80xf32>
    %cst = arith.constant 0.000000e+00 : f32
    %8 = vector.broadcast %cst : f32 to vector<1x8x80xf32>
    %9 = arith.subf %8, %7 : vector<1x8x80xf32>
    %10 = math.exp %9 : vector<1x8x80xf32>
    %cst_5 = arith.constant 1.000000e+00 : f32
    %11 = vector.broadcast %cst_5 : f32 to vector<1x8x80xf32>
    %12 = arith.addf %11, %10 : vector<1x8x80xf32>
    %13 = tpu.reciprocal %12 {approx = true} : vector<1x8x80xf32> -> vector<1x8x80xf32>
    %14 = arith.mulf %12, %13 : vector<1x8x80xf32>
    %cst_6 = arith.constant 2.000000e+00 : f32
    %15 = vector.broadcast %cst_6 : f32 to vector<1x8x80xf32>
    %16 = arith.subf %15, %14 : vector<1x8x80xf32>
    %17 = arith.mulf %13, %16 : vector<1x8x80xf32>
    %cst_7 = arith.constant 0.000000e+00 : f32
    %18 = vector.broadcast %cst_7 : f32 to vector<1x8x80xf32>
    %19 = arith.cmpf oge, %0, %18 : vector<1x8x80xf32>
    %20 = arith.mulf %10, %17 : vector<1x8x80xf32>
    %21 = arith.select %19, %17, %20 : vector<1x8x80xi1>, vector<1x8x80xf32>
    %cst_8 = arith.constant 0.000000e+00 : f32
    %22 = vector.broadcast %cst_8 : f32 to vector<1x8x80xf32>
    %23 = arith.maximumf %0, %22 : vector<1x8x80xf32>
    %24 = arith.mulf %0, %6 : vector<1x8x80xf32>
    %25 = arith.subf %23, %24 : vector<1x8x80xf32>
    %26 = math.log1p %10 : vector<1x8x80xf32>
    %27 = arith.addf %25, %26 : vector<1x8x80xf32>
    %28 = arith.mulf %21, %6 : vector<1x8x80xf32>
    %cst_9 = arith.constant 1.000000e+00 : f32
    %29 = vector.broadcast %cst_9 : f32 to vector<1x8x80xf32>
    %30 = arith.subf %29, %21 : vector<1x8x80xf32>
    %cst_10 = arith.constant 1.000000e+00 : f32
    %31 = vector.broadcast %cst_10 : f32 to vector<1x8x80xf32>
    %32 = arith.subf %31, %6 : vector<1x8x80xf32>
    %33 = arith.mulf %30, %32 : vector<1x8x80xf32>
    %34 = arith.addf %28, %33 : vector<1x8x80xf32>
    %cst_11 = arith.constant 1.000000e+00 : f32
    %35 = vector.broadcast %cst_11 : f32 to vector<1x8x80xf32>
    %36 = arith.subf %35, %34 : vector<1x8x80xf32>
    %37 = arith.mulf %36, %36 : vector<1x8x80xf32>
    %38 = arith.mulf %27, %37 : vector<1x8x80xf32>
    %cst_12 = arith.constant -5.000000e-01 : f32
    %39 = vector.broadcast %cst_12 : f32 to vector<1x8x80xf32>
    %40 = arith.mulf %39, %6 : vector<1x8x80xf32>
    %cst_13 = arith.constant 7.500000e-01 : f32
    %41 = vector.broadcast %cst_13 : f32 to vector<1x8x80xf32>
    %42 = arith.addf %41, %40 : vector<1x8x80xf32>
    %43 = arith.mulf %42, %38 : vector<1x8x80xf32>
    %cst_14 = arith.constant dense<0.000000e+00> : vector<8x80xf32>
    %44 = vector.multi_reduction <add>, %43, %cst_14 [0] : vector<1x8x80xf32> to vector<8x80xf32>
    %c0_15 = arith.constant 0 : index
    %c0_16 = arith.constant 0 : index
    %c0_17 = arith.constant 0 : index
    %45 = vector.load %arg3[%c0_15, %c0_16, %c0_17] : memref<1x8x80xf32, #tpu.memory_space<vmem>>, vector<1x8x80xf32>
    %46 = vector.shape_cast %45 : vector<1x8x80xf32> to vector<8x80xf32>
    %47 = vector.shape_cast %44 : vector<8x80xf32> to vector<1x8x80xf32>
    tpu.vector_store %arg3[%c0_15, %c0_16, %c0_17], %47 {strides = array<i32>} : memref<1x8x80xf32, #tpu.memory_space<vmem>>, vector<1x8x80xf32>,
    return
  }
  func.func @transform_0(%arg0: i32) -> (i32, i32, i32) {
    %c0_i32 = arith.constant 0 : i32
    %c0_i32_0 = arith.constant 0 : i32
    %c0_i32_1 = arith.constant 0 : i32
    return %arg0, %c0_i32, %c0_i32_0 : i32, i32, i32
  }
  func.func @transform_1(%arg0: i32) -> (i32, i32, i32) {
    %c0_i32 = arith.constant 0 : i32
    %c0_i32_0 = arith.constant 0 : i32
    %c0_i32_1 = arith.constant 0 : i32
    return %arg0, %c0_i32, %c0_i32_0 : i32, i32, i32
  }
  func.func @transform_2(%arg0: i32) -> (i32, i32, i32) {
    %c0_i32 = arith.constant 0 : i32
    %c0_i32_0 = arith.constant 0 : i32
    %c0_i32_1 = arith.constant 0 : i32
    return %arg0, %c0_i32, %c0_i32_0 : i32, i32, i32
  }
}

</mosaic_0001>

<bundles_post_ra>
// kernel: tpu_custom_call.1
= control target key start
LH: loop header
LB: loop body
LE: loop exit
PB: predicated region body
PF: predicated region fallthrough
CT: control target
= control target key end

     0   :  { %7 = vsyncpa [#allocation3], 0  ;;  %s535_s0 = inlined_call_operand.vmem [shape: f32[2,8,80], index: 0, kind: input, shape index: {}]   ;;  %s536_s1 = inlined_call_operand.vmem [shape: s32[2,8,1], index: 1, kind: input, shape index: {}]   ;;  %s537_s2 = inlined_call_operand.hbm [shape: f32[2,8,80], index: 2, kind: output, shape index: {}]  }
   0x1   :  { %9 = vsyncpa [#allocation3 + $0x1], 0  ;;  %s432_s9 = smov 0   ;;  %s434_s10 = smov 0  }
   0x2   :  { %s436_s11 = smov 0   ;;  %s438_s12 = smov 0  }
   0x3 LB: > { %s453_s13 = sadd.s32 4294967295, %s412_s12   ;;  %s290_s14 = sadd.s32 4294967294, %s412_s12   ;;  %s412_s12 = sphi %s438_s12, %s543_s12   ;;  %s408_s11 = sphi %s436_s11, %s542_s11   ;;  %s404_s10 = sphi %s434_s10, %s541_s10   ;;  %s400_s9 = sphi %s432_s9, %s540_s9  }
   0x4   : > { %s457_s15 = sadd.s32 1, %s412_s12   ;;  %s74_s16 = sadd.s32 1, %s408_s11 }
   0x5   : > { %s71_s17 = ssub.s32 %s412_s12, %s457_s15  ;;  %p84_p0 = scmp.ne.s32.totalorder %s408_s11, %s404_s10 }
   0x6   : > { %p72_p1 = scmp.eq.s32.totalorder %s71_s17, 0  ;;  %p85_p2 = scmp.eq.s32.totalorder %s453_s13, 1 }
   0x7   : > { %p90_p3 = scmp.ne.s32.totalorder %s404_s10, %s400_s9  ;;  %p91_p4 = scmp.eq.s32.totalorder %s290_s14, 1 }
   0x8   : > { %s468_s18 = scalar_select %p72_p1, %s408_s11, %s74_s16  }
   0x9   : > { %p470_p5 = por %p85_p2, %p84_p0  ;;  %p474_p6 = por %p91_p4, %p90_p3 }
   0xa   : > { %p293_p7 = scmp.ge.s32.totalorder %s412_s12, 1  ;;  %p123_p8 = scmp.lt.s32.totalorder %s412_s12, 3 }
   0xc   : > { %p124_p9 = pnand %p293_p7, %p123_p8 }
   0xd   : > { %p148_p10 = scmp.lt.s32.totalorder (!%p124_p9), %s453_s13, 1  ;;  %v414_v0 = vmov (!%p124_p9), 0   ;;  %v158_v12 = vlaneseq (!%p124_p9)  ;;  %v415_v22 = vmov (!%p124_p9), 0.0   ;;  %s145_s29 = sand.u32 (!%p124_p9), 1, %s404_s10   ;;  %vm203_vm3 = vcmask (!%p124_p9), 654336  }
   0xe   : > { %127 = sbr.rel (%p124_p9) target bundleno = 184 (0xb8), region = 28  ;;  %343 = vset.pattern.permute.xlu0 (!%p124_p9), %v414_v0  ;;  %s294_s30 = sshll.u32 (!%p124_p9), %s145_s29, 3 }
   0xf   : > { %v159_v15 = vand.u32 (!%p124_p9), 127, %v158_v12  ;;  %s299_s3 = sshll.u32 (!%p124_p9), %s453_s13, 7  ;;  %s147_s4 = scalar_lea.vmem (!%p124_p9), [#allocation2], %s294_s30 }
  0x10   : > { %s219_s5 = sshll.u32 (!%p124_p9), %s147_s4, 4  ;;  %s493_s8 = scalar_lea.hbm (!%p124_p9), %s537_s2, %s299_s3  ;;  %s495_s5 = int_to_ptr.vmem [resolvable:$true] %s219_s5 }
  0x11   : > { %s206_s14 = scalar_lea.sflag (!%p124_p9), [#allocation3], %s145_s29  ;;  %s350_s16 = scalar_lea.vmem (!%p124_p9), %s495_s5, 128 }
  0x12   : > { %p351_p11 = scmp.ne.s32.totalorder (!%p124_p9), %s495_s5, %s350_s16 }
  0x14   : > { %p352_p12 = pnand (!%p124_p9), %p351_p11, %p470_p5 }
  0x15   : > { %s149_s21 = scalar_select %p148_p10, %s453_s13, 1 }
  0x16   : > { %p353_p13 = pneg %p352_p12  ;;  %s416_s13 = smov [#allocation2]  }
  0x17   : > { %s295_s22 = sshll.u32 %s149_s21, 3  ;;  %s354_s17 = sshll.u32 %s416_s13, 4  ;;  %s355_s17 = int_to_ptr.vmem [resolvable:$false] %s354_s17 }
  0x18   : > { %s155_s25 = scalar_lea.vmem %s536_s1, %s295_s22  ;;  %s151_s28 = scalar_lea.vmem %s535_s0, %s295_s22 }
  0x19   : > { %v157_v1 = vld [vmem:[%s155_s25] sm:$0xff]  ;;  %s356_s21 = scalar_lea.vmem %s355_s17, 256  ;;  %p357_p0 = scmp.lt.s32.totalorder %s495_s5, %s355_s17 }
  0x1a   : > { %161 = vperm.xlu0 %343, %v157_v1   ;;  %v156_v2 = vld [vmem:[%s151_s28] sm:$0xff]  ;;  %p358_p1 = scmp.lt.s32.totalorder %s356_s21, %s350_s16 }
  0x1b   : > { %v166_v3 = vand.u32 2147483647, %v156_v2  ;;  %vm175_vm0 = vcmp.ge.f32.partialorder %v156_v2, 0.0  ;;  %v178_v24 = vmax.f32 %v156_v2, 0.0 }
  0x1c   : > { %p359_p2 = por %p358_p1, %p357_p0 }
  0x1d   : > { %v167_v4 = vsub.f32 0.0, %v166_v3 }
  0x1e   : > { %p360_p3 = pnand %p359_p2, %p353_p13 }
  0x1f   : > { %v168_v5 = vmul.f32 1.442695, %v167_v4 }
  0x21   : > { %344 = vpow2.f32 %v168_v5 }
  0x2b   : > { %v345_v6 = vpop.eup %344 }
  0x2c   : > { %v170_v7 = vadd.f32 1.0, %v345_v6  ;;  %v184_v14 = vmul.f32 -0.5, %v345_v6  ;;  %v187_v20 = vand.u32 2147483647, %v345_v6 }
  0x2e   : > { %346 = vrcp.f32 %v170_v7  ;;  %v185_v18 = vadd.f32 1.0, %v184_v14  ;;  %vm188_vm2 = vcmp.lt.f32.partialorder %v187_v20, 0.0004427343 }
  0x2f   : > { %348 = vlog2.f32 %v170_v7 }
  0x30   : > { %v186_v28 = vmul.f32 %v345_v6, %v185_v18 }
  0x38   : > { %v347_v8 = vpop.eup %346 }
  0x39   : > { %v172_v9 = vmul.f32 %v347_v8, %v170_v7  ;;  %v349_v19 = vpop.eup %348 }
  0x3a   : > { %v183_v27 = vmul.f32 0.6931472, %v349_v19 }
  0x3b   : > { %v173_v10 = vsub.f32 2.0, %v172_v9 }
  0x3c   : > { %v189_v33 = vsel %vm188_vm2, %v186_v28, %v183_v27 }
  0x3d   : > { %v174_v11 = vmul.f32 %v347_v8, %v173_v10 }
  0x3f   : > { %v176_v13 = vmul.f32 %v345_v6, %v174_v11 }
  0x41   : > { %v177_v16 = vsel %vm175_vm0, %v174_v11, %v176_v13 }
  0x42   : > { %v192_v21 = vsub.f32 1.0, %v177_v16 }
  0x99   : > { %v162_v17 = vpop.permute.xlu0 %161 }
  0x9a   : > { %vm163_vm1 = vcmp.eq.s32.totalorder %v159_v15, %v162_v17 }
  0x9b   : > { %v297_v23 = vsel %vm163_vm1, 1.0, %v415_v22 }
  0x9c   : > { %v179_v25 = vmul.f32 %v297_v23, %v156_v2  ;;  %v193_v26 = vsub.f32 1.0, %v297_v23  ;;  %v191_v29 = vmul.f32 %v297_v23, %v177_v16  ;;  %v199_v35 = vmul.f32 -0.5, %v297_v23 }
  0x9e   : > { %v194_v30 = vmul.f32 %v193_v26, %v192_v21  ;;  %v180_v31 = vsub.f32 %v178_v24, %v179_v25  ;;  %v200_v38 = vadd.f32 0.75, %v199_v35 }
  0xa0   : > { %v195_v32 = vadd.f32 %v194_v30, %v191_v29  ;;  %v190_v36 = vadd.f32 %v189_v33, %v180_v31 }
  0xa2   : > { %v196_v34 = vsub.f32 1.0, %v195_v32 }
  0xa4   : > { %v197_v37 = vmul.f32 %v196_v34, %v196_v34 }
  0xa6   : > { %v198_v39 = vmul.f32 %v197_v37, %v190_v36 }
  0xa8   : > { %v201_v40 = vmul.f32 %v200_v38, %v198_v39 }
  0xaa   : > { %204 = vst.msk [vmem:[%s147_s4] sm:$0xff] %vm203_vm3, %v201_v40 }
  0xab   : > { %363 = shalt.err (!%p360_p3)
}
  0xac   : > { %s364_s22 = scalar_lea.hbm %s493_s8, 128  ;;  %s368_s25 = scalar_lea.hbm %s537_s2, 256 }
  0xad   : > { %p365_p4 = scmp.ne.s32.totalorder %s493_s8, %s364_s22  ;;  %p369_p9 = scmp.lt.u32.totalorder %s493_s8, %s537_s2 }
  0xae   : > { %p370_p10 = scmp.lt.u32.totalorder %s368_s25, %s364_s22  ;;  %p372_p12 = scmp.lt.u32.totalorder %s364_s22, %s493_s8 }
  0xaf   : > { %p366_p7 = pnand %p365_p4, %p470_p5 }
  0xb0   : > { %p371_p11 = por %p370_p10, %p369_p9 }
  0xb1   : > { %p367_p8 = pneg %p366_p7 }
  0xb2   : > { %p373_p13 = por %p372_p12, %p371_p11 }
  0xb4   : > { %p374_p0 = pnand %p373_p13, %p367_p8 }
  0xb6   : > { %377 = shalt.err (!%p374_p0)
}
  0xb7   : > { %302 = dma.vmem_to_hbm [thread:$0]  (%p470_p5), %s495_s5, 128, %s493_s8, %s206_s14  }
  0xb8 PF: > { %p308_p1 = scmp.ge.s32.totalorder %s412_s12, 2  ;;  %s231_s28 = sand.u32 1, %s400_s9  }
  0xb9   : > { %s232_s29 = scalar_lea.sflag [#allocation3], %s231_s28 }
  0xba   : > { %p305_p2 = pnand %p308_p1, %p474_p6 }
  0xbc   : > { %395 = dma.done.wait (!%p305_p2), %s232_s29, 128  }
  0xbd   : > { %397 = vsyncadd (!%p305_p2), %s232_s29, 4294967168  ;;  %p12_p3 = scmp.ge.s32.totalorder %s457_s15, 4   ;;  %s540_s9 = smov %s404_s10 }
  0xbe   : > { %s541_s10 = smov %s408_s11  ;;  %s542_s11 = smov %s468_s18 }
  0xbf   : > { %s543_s12 = smov %s457_s15  ;;  %14 = sbr.rel (!%p12_p3) target bundleno = 3 (0x3), region = 66 }
  0xc6   :  { %237 = vsyncpa [#allocation3], 1 }
  0xc7   :  { %239 = vsyncpa [#allocation3 + $0x1], 1 }

</bundles_post_ra>
